<compile_context>
chip_gen: v5e
topology: v5e:2x2
jax: 0.10.0
libtpu: 0.0.40
codegen_flags: <defaults>
</compile_context>

<pallas_src>
import jax
import jax.numpy as jnp
from jax.experimental import pallas as pl
from jax.experimental.pallas import tpu as pltpu

# ------------------------- model dimensions (small, synthetic) -------------------------
FRAME = 16           # raw samples per frame (feature dim fed to the encoder projection)
HIDDEN = 32          # "wav2vec.config.hidden_size" stand-in
FFN = 4 * HIDDEN     # transformer FFN inner dim (= 128)
NUM_CLASSES = 8
LANES = 128          # TPU lane width; last dims are zero-padded to this

# Row indices of the (8, LANES) vector pack.
_V_B_ENC, _V_LN1_G, _V_LN1_B, _V_B1, _V_B2, _V_LN2_G, _V_LN2_B, _V_B_CLS = range(8)
# Slab indices of the (6, LANES, LANES) weight pack.
_W_ENC, _W_QKV, _W_O, _W_1, _W_2, _W_CLS = range(6)


def _masked_layernorm(x, g, b, mask, true_dim, eps=1e-5):
    """LayerNorm over the first `true_dim` lanes of a 128-lane zero-padded activation."""
    xm = jnp.where(mask, x, 0.0)
    mean = jnp.sum(xm, axis=-1, keepdims=True) * (1.0 / true_dim)
    diff = jnp.where(mask, xm - mean, 0.0)
    var = jnp.sum(diff * diff, axis=-1, keepdims=True) * (1.0 / true_dim)
    # padded lanes: diff = 0, g = 0, b = 0  ->  output stays exactly 0 there
    return diff * jax.lax.rsqrt(var + eps) * g + b


def audio_classifier_kernel(frames_ref, w_ref, vec_ref, out_ref):
    # frames_ref: (B_BLK, T, 128)  -- frame features zero-padded to 128 lanes
    # w_ref:      (6, 128, 128)    -- zero-padded packed weights
    # vec_ref:    (8, 128)         -- zero-padded packed biases / LN gamma,beta
    # out_ref:    (B_BLK, 128)     -- lane-dense padded logits slab
    b_blk, seq_t, _ = frames_ref.shape

    vecs = vec_ref[...]                                       # (8, 128), one load
    hid_mask = jax.lax.broadcasted_iota(jnp.int32, (1, LANES), 1) < HIDDEN

    # Stack B_BLK*T rows on the sublane axis for all dense layers.
    x = frames_ref[...].reshape(b_blk * seq_t, LANES)         # [BT, 128]

    # ---- feature projection ("wav2vec" front end stand-in) ----
    h0 = jnp.dot(x, w_ref[_W_ENC], preferred_element_type=jnp.float32) + vecs[_V_B_ENC:_V_B_ENC + 1, :]
    h0 = jax.nn.gelu(h0)                                      # [BT, 128]; lanes >= HIDDEN stay 0

    # ---- single-head self-attention, Q/K/V fused into one matmul ----
    qkv = jnp.dot(h0, w_ref[_W_QKV], preferred_element_type=jnp.float32)     # [BT, 128]
    qkv3 = qkv.reshape(b_blk, seq_t, LANES)
    q = qkv3[..., 0 * HIDDEN:1 * HIDDEN]
    k = qkv3[..., 1 * HIDDEN:2 * HIDDEN]
    v = qkv3[..., 2 * HIDDEN:3 * HIDDEN]
    scale = 1.0 / jnp.sqrt(jnp.float32(HIDDEN))
    # contract the last dims directly -> no materialized transpose of k
    scores = jnp.einsum('bqd,bkd->bqk', q, k, preferred_element_type=jnp.float32) * scale
    scores = scores - jnp.max(scores, axis=-1, keepdims=True)
    p = jnp.exp(scores)
    p = p * pl.reciprocal(jnp.sum(p, axis=-1, keepdims=True), approx=True)
    attn = jnp.einsum('bqk,bkd->bqd', p, v, preferred_element_type=jnp.float32)   # [B, T, H]
    attn = attn.reshape(b_blk * seq_t, HIDDEN)
    attn = jnp.dot(attn, w_ref[_W_O][:HIDDEN, :], preferred_element_type=jnp.float32)  # [BT, 128]

    h1 = _masked_layernorm(h0 + attn,
                           vecs[_V_LN1_G:_V_LN1_G + 1, :],
                           vecs[_V_LN1_B:_V_LN1_B + 1, :],
                           hid_mask, HIDDEN)

    # ---- FFN ----
    f = jnp.dot(h1, w_ref[_W_1], preferred_element_type=jnp.float32) + vecs[_V_B1:_V_B1 + 1, :]
    f = jax.nn.gelu(f)
    f = jnp.dot(f, w_ref[_W_2], preferred_element_type=jnp.float32) + vecs[_V_B2:_V_B2 + 1, :]
    h2 = _masked_layernorm(h1 + f,
                           vecs[_V_LN2_G:_V_LN2_G + 1, :],
                           vecs[_V_LN2_B:_V_LN2_B + 1, :],
                           hid_mask, HIDDEN)                  # [BT, 128]  (last_hidden_state)

    # ---- mean-pool over time (dim=1 in PyTorch) + linear classifier ----
    pooled = jnp.mean(h2.reshape(b_blk, seq_t, LANES), axis=1)                    # [B_BLK, 128]
    logits = (jnp.dot(pooled, w_ref[_W_CLS], preferred_element_type=jnp.float32)
              + vecs[_V_B_CLS:_V_B_CLS + 1, :])
    out_ref[...] = logits                                                         # lane-dense store


# ------------------------- parameter packing -------------------------
def _pad2(x, rows=LANES, cols=LANES):
    return jnp.pad(x, ((0, rows - x.shape[0]), (0, cols - x.shape[1])))


def _pad1(x, cols=LANES):
    return jnp.pad(x, (0, cols - x.shape[0]))


def init_params(key, num_classes=NUM_CLASSES):
    ks = jax.random.split(key, 8)
    s = 0.02
    w_enc = jax.random.normal(ks[0], (FRAME, HIDDEN), jnp.float32) * s
    wq = jax.random.normal(ks[1], (HIDDEN, HIDDEN), jnp.float32) * s
    wk = jax.random.normal(ks[2], (HIDDEN, HIDDEN), jnp.float32) * s
    wv = jax.random.normal(ks[3], (HIDDEN, HIDDEN), jnp.float32) * s
    wo = jax.random.normal(ks[4], (HIDDEN, HIDDEN), jnp.float32) * s
    w1 = jax.random.normal(ks[5], (HIDDEN, FFN), jnp.float32) * s
    w2 = jax.random.normal(ks[6], (FFN, HIDDEN), jnp.float32) * s
    w_cls = jax.random.normal(ks[7], (HIDDEN, num_classes), jnp.float32) * s

    w_pack = jnp.stack([
        _pad2(w_enc),                                    # _W_ENC : rows 0:16,  cols 0:32
        _pad2(jnp.concatenate([wq, wk, wv], axis=1)),    # _W_QKV : rows 0:32,  cols 0:96 (fused)
        _pad2(wo),                                       # _W_O   : rows 0:32,  cols 0:32
        _pad2(w1),                                       # _W_1   : rows 0:32,  cols 0:128
        _pad2(w2),                                       # _W_2   : rows 0:128, cols 0:32
        _pad2(w_cls),                                    # _W_CLS : rows 0:32,  cols 0:C
    ])                                                   # (6, 128, 128)

    vec_pack = jnp.stack([
        _pad1(jnp.zeros((HIDDEN,), jnp.float32)),        # b_enc
        _pad1(jnp.ones((HIDDEN,), jnp.float32)),         # ln1 gamma
        _pad1(jnp.zeros((HIDDEN,), jnp.float32)),        # ln1 beta
        _pad1(jnp.zeros((FFN,), jnp.float32)),           # b1
        _pad1(jnp.zeros((HIDDEN,), jnp.float32)),        # b2
        _pad1(jnp.ones((HIDDEN,), jnp.float32)),         # ln2 gamma
        _pad1(jnp.zeros((HIDDEN,), jnp.float32)),        # ln2 beta
        _pad1(jnp.zeros((num_classes,), jnp.float32)),   # classifier bias
    ])                                                   # (8, 128)

    return {"w_pack": w_pack, "vec_pack": vec_pack}


# ------------------------- forward wrapper -------------------------
def audio_classifier_forward(input_audio, params, num_classes=NUM_CLASSES, batch_block=8):
    """input_audio: [B, L] float32 raw waveform.  Returns logits [B, num_classes]."""
    B, L = input_audio.shape
    T = L // FRAME
    frames = input_audio[:, : T * FRAME].reshape(B, T, FRAME)
    # zero-pad frame features to a full 128-lane minor dim (lane-dense input block)
    frames = jnp.pad(frames, ((0, 0), (0, 0), (0, LANES - FRAME)))

    # Fold the batch: several clips per grid step (amortizes per-step overhead, grows MXU M-dim).
    # For large B this still yields multiple "parallel" grid steps (v7x megacore sharding).
    b_blk = min(B, batch_block)
    n_steps = -(-B // b_blk)
    b_pad = n_steps * b_blk
    if b_pad != B:
        frames = jnp.pad(frames, ((0, b_pad - B), (0, 0), (0, 0)))

    out = pl.pallas_call(
        audio_classifier_kernel,
        out_shape=jax.ShapeDtypeStruct((b_pad, LANES), jnp.float32),
        grid_spec=pltpu.PrefetchScalarGridSpec(
            num_scalar_prefetch=0,
            grid=(n_steps,),
            in_specs=[
                pl.BlockSpec((b_blk, T, LANES), lambda i: (i, 0, 0)),    # clips for this step
                pl.BlockSpec((6, LANES, LANES), lambda i: (0, 0, 0)),    # packed weights
                pl.BlockSpec((8, LANES), lambda i: (0, 0)),              # packed bias/LN vectors
            ],
            out_specs=pl.BlockSpec((b_blk, LANES), lambda i: (i, 0)),
        ),
        compiler_params=pltpu.CompilerParams(dimension_semantics=("parallel",)),
    )(frames, params["w_pack"], params["vec_pack"])

    return out[:B, :num_classes]


if __name__ == "__main__":
    key = jax.random.PRNGKey(0)
    k_audio, k_params = jax.random.split(key)

    B, L = 2, 128                                   # 2 clips, 128 raw samples -> T = 8 frames
    input_audio = jax.random.normal(k_audio, (B, L), jnp.float32)
    params = init_params(k_params, NUM_CLASSES)

    logits = audio_classifier_forward(input_audio, params, NUM_CLASSES)
    jax.block_until_ready(logits)
    assert logits.shape == (B, NUM_CLASSES)
    assert bool(jnp.all(jnp.isfinite(logits)))
    print("KERNEL_OK")
</pallas_src>

<mosaic_0001>
module attributes {stable_mosaic.version = 11 : i64} {
  func.func @audio_classifier_kernel(%arg0: i32, %arg1: memref<2x8x128xf32, #tpu.memory_space<vmem>>, %arg2: memref<6x128x128xf32, #tpu.memory_space<vmem>>, %arg3: memref<8x128xf32, #tpu.memory_space<vmem>>, %arg4: memref<2x128xf32, #tpu.memory_space<vmem>>) attributes {dimension_semantics = [#tpu.dimension_semantics<parallel>], iteration_bounds = array<i64: 1>, scalar_prefetch = 0 : i64, scratch_operands = 0 : i64, tpu.core_type = #tpu.core_type<tc>, window_params = [{transform_indices = @transform_0, window_bounds = array<i64: 2, 8, 128>}, {pipeline_mode = #tpu.pipeline_mode<synchronous>, transform_indices = @transform_1, window_bounds = array<i64: 6, 128, 128>}, {pipeline_mode = #tpu.pipeline_mode<synchronous>, transform_indices = @transform_2, window_bounds = array<i64: 8, 128>}, {transform_indices = @transform_3, window_bounds = array<i64: 2, 128>}]} {
    %c0 = arith.constant 0 : index
    %c0_0 = arith.constant 0 : index
    %0 = vector.load %arg3[%c0, %c0_0] : memref<8x128xf32, #tpu.memory_space<vmem>>, vector<8x128xf32>
    %1 = tpu.iota {dimensions = array<i32: 1>} : vector<1x128xi32>
    %c32_i32 = arith.constant 32 : i32
    %2 = vector.broadcast %c32_i32 : i32 to vector<1x128xi32>
    %3 = arith.cmpi slt, %1, %2 : vector<1x128xi32>
    %c0_1 = arith.constant 0 : index
    %c0_2 = arith.constant 0 : index
    %c0_3 = arith.constant 0 : index
    %4 = vector.load %arg1[%c0_1, %c0_2, %c0_3] : memref<2x8x128xf32, #tpu.memory_space<vmem>>, vector<2x8x128xf32>
    %5 = vector.shape_cast %4 : vector<2x8x128xf32> to vector<16x128xf32>
    %c0_4 = arith.constant 0 : index
    %c0_5 = arith.constant 0 : index
    %c0_6 = arith.constant 0 : index
    %6 = vector.load %arg2[%c0_4, %c0_5, %c0_6] : memref<6x128x128xf32, #tpu.memory_space<vmem>>, vector<1x128x128xf32>
    %7 = vector.shape_cast %6 : vector<1x128x128xf32> to vector<128x128xf32>
    %cst = arith.constant dense<0.000000e+00> : vector<16x128xf32>
    %8 = tpu.matmul %5, %7, %cst {dimension_numbers = #tpu.dot_dimension_numbers<[1], [0], [0], [1], [0, 0, 1, 1], [], []>} : vector<16x128xf32>, vector<128x128xf32>, vector<16x128xf32> -> vector<16x128xf32>
    %9 = vector.extract_strided_slice %0 {offsets = [0, 0], sizes = [1, 128], strides = [1, 1]} : vector<8x128xf32> to vector<1x128xf32>
    %10 = vector.broadcast %9 : vector<1x128xf32> to vector<16x128xf32>
    %11 = arith.addf %8, %10 : vector<16x128xf32>
    %12 = arith.mulf %11, %11 : vector<16x128xf32>
    %13 = arith.mulf %11, %12 : vector<16x128xf32>
    %cst_7 = arith.constant 4.471500e-02 : f32
    %14 = vector.broadcast %cst_7 : f32 to vector<16x128xf32>
    %15 = arith.mulf %14, %13 : vector<16x128xf32>
    %16 = arith.addf %11, %15 : vector<16x128xf32>
    %cst_8 = arith.constant 0.797884583 : f32
    %17 = vector.broadcast %cst_8 : f32 to vector<16x128xf32>
    %18 = arith.mulf %17, %16 : vector<16x128xf32>
    %19 = math.tanh %18 : vector<16x128xf32>
    %cst_9 = arith.constant 1.000000e+00 : f32
    %20 = vector.broadcast %cst_9 : f32 to vector<16x128xf32>
    %21 = arith.addf %20, %19 : vector<16x128xf32>
    %cst_10 = arith.constant 5.000000e-01 : f32
    %22 = vector.broadcast %cst_10 : f32 to vector<16x128xf32>
    %23 = arith.mulf %22, %21 : vector<16x128xf32>
    %24 = arith.mulf %11, %23 : vector<16x128xf32>
    %c1 = arith.constant 1 : index
    %c0_11 = arith.constant 0 : index
    %c0_12 = arith.constant 0 : index
    %25 = vector.load %arg2[%c1, %c0_11, %c0_12] : memref<6x128x128xf32, #tpu.memory_space<vmem>>, vector<1x128x128xf32>
    %26 = vector.shape_cast %25 : vector<1x128x128xf32> to vector<128x128xf32>
    %cst_13 = arith.constant dense<0.000000e+00> : vector<16x128xf32>
    %27 = tpu.matmul %24, %26, %cst_13 {dimension_numbers = #tpu.dot_dimension_numbers<[1], [0], [0], [1], [0, 0, 1, 1], [], []>} : vector<16x128xf32>, vector<128x128xf32>, vector<16x128xf32> -> vector<16x128xf32>
    %28 = vector.shape_cast %27 : vector<16x128xf32> to vector<2x8x128xf32>
    %29 = vector.extract_strided_slice %28 {offsets = [0, 0, 0], sizes = [2, 8, 32], strides = [1, 1, 1]} : vector<2x8x128xf32> to vector<2x8x32xf32>
    %30 = vector.extract_strided_slice %28 {offsets = [0, 0, 32], sizes = [2, 8, 32], strides = [1, 1, 1]} : vector<2x8x128xf32> to vector<2x8x32xf32>
    %31 = vector.extract_strided_slice %28 {offsets = [0, 0, 64], sizes = [2, 8, 32], strides = [1, 1, 1]} : vector<2x8x128xf32> to vector<2x8x32xf32>
    %cst_14 = arith.constant 3.200000e+01 : f32
    %32 = math.sqrt %cst_14 : f32
    %cst_15 = arith.constant 1.000000e+00 : f32
    %33 = arith.divf %cst_15, %32 : f32
    "tpu.trace_start"() <{level = 10 : i32, message = "bqd,bkd->bqk"}> : () -> ()
    %cst_16 = arith.constant dense<0.000000e+00> : vector<2x8x8xf32>
    %34 = tpu.matmul %29, %30, %cst_16 {dimension_numbers = #tpu.dot_dimension_numbers<[2], [2], [1], [1], [0, 0, 0, 1, 1, 1], [0], [0]>} : vector<2x8x32xf32>, vector<2x8x32xf32>, vector<2x8x8xf32> -> vector<2x8x8xf32>
    "tpu.trace_stop"() : () -> ()
    %35 = vector.broadcast %33 : f32 to vector<2x8x8xf32>
    %36 = arith.mulf %34, %35 : vector<2x8x8xf32>
    %cst_17 = arith.constant dense<0xFF800000> : vector<2x8xf32>
    %37 = vector.multi_reduction <maximumf>, %36, %cst_17 [2] : vector<2x8x8xf32> to vector<2x8xf32>
    %38 = vector.shape_cast %37 : vector<2x8xf32> to vector<2x8x1xf32>
    %39 = vector.broadcast %38 : vector<2x8x1xf32> to vector<2x8x8xf32>
    %40 = arith.subf %36, %39 : vector<2x8x8xf32>
    %41 = math.exp %40 : vector<2x8x8xf32>
    %cst_18 = arith.constant dense<0.000000e+00> : vector<2x8xf32>
    %42 = vector.multi_reduction <add>, %41, %cst_18 [2] : vector<2x8x8xf32> to vector<2x8xf32>
    %43 = vector.shape_cast %42 : vector<2x8xf32> to vector<2x8x1xf32>
    %44 = tpu.reciprocal %43 {approx = true} : vector<2x8x1xf32> -> vector<2x8x1xf32>
    %45 = vector.broadcast %44 : vector<2x8x1xf32> to vector<2x8x8xf32>
    %46 = arith.mulf %41, %45 : vector<2x8x8xf32>
    "tpu.trace_start"() <{level = 10 : i32, message = "bqk,bkd->bqd"}> : () -> ()
    %cst_19 = arith.constant dense<0.000000e+00> : vector<2x8x32xf32>
    %47 = tpu.matmul %46, %31, %cst_19 {dimension_numbers = #tpu.dot_dimension_numbers<[2], [1], [1], [2], [0, 0, 0, 1, 1, 2], [0], [0]>} : vector<2x8x8xf32>, vector<2x8x32xf32>, vector<2x8x32xf32> -> vector<2x8x32xf32>
    "tpu.trace_stop"() : () -> ()
    %48 = vector.shape_cast %47 : vector<2x8x32xf32> to vector<16x32xf32>
    %c2 = arith.constant 2 : index
    %c0_20 = arith.constant 0 : index
    %c0_21 = arith.constant 0 : index
    %49 = vector.load %arg2[%c2, %c0_20, %c0_21] : memref<6x128x128xf32, #tpu.memory_space<vmem>>, vector<1x128x128xf32>
    %50 = vector.shape_cast %49 : vector<1x128x128xf32> to vector<128x128xf32>
    %51 = vector.extract_strided_slice %50 {offsets = [0, 0], sizes = [32, 128], strides = [1, 1]} : vector<128x128xf32> to vector<32x128xf32>
    %cst_22 = arith.constant dense<0.000000e+00> : vector<16x128xf32>
    %52 = tpu.matmul %48, %51, %cst_22 {dimension_numbers = #tpu.dot_dimension_numbers<[1], [0], [0], [1], [0, 0, 1, 1], [], []>} : vector<16x32xf32>, vector<32x128xf32>, vector<16x128xf32> -> vector<16x128xf32>
    %53 = arith.addf %24, %52 : vector<16x128xf32>
    %54 = vector.extract_strided_slice %0 {offsets = [1, 0], sizes = [1, 128], strides = [1, 1]} : vector<8x128xf32> to vector<1x128xf32>
    %55 = vector.extract_strided_slice %0 {offsets = [2, 0], sizes = [1, 128], strides = [1, 1]} : vector<8x128xf32> to vector<1x128xf32>
    %cst_23 = arith.constant 0.000000e+00 : f32
    %56 = vector.shape_cast %3 : vector<1x128xi1> to vector<1x128xi1>
    %57 = vector.broadcast %56 : vector<1x128xi1> to vector<16x128xi1>
    %58 = vector.broadcast %cst_23 : f32 to vector<16x128xf32>
    %59 = arith.select %57, %53, %58 : vector<16x128xi1>, vector<16x128xf32>
    %cst_24 = arith.constant dense<0.000000e+00> : vector<16xf32>
    %60 = vector.multi_reduction <add>, %59, %cst_24 [1] : vector<16x128xf32> to vector<16xf32>
    %61 = vector.shape_cast %60 : vector<16xf32> to vector<16x1xf32>
    %cst_25 = arith.constant 3.125000e-02 : f32
    %62 = vector.broadcast %cst_25 : f32 to vector<16x1xf32>
    %63 = arith.mulf %61, %62 : vector<16x1xf32>
    %64 = vector.broadcast %63 : vector<16x1xf32> to vector<16x128xf32>
    %65 = arith.subf %59, %64 : vector<16x128xf32>
    %cst_26 = arith.constant 0.000000e+00 : f32
    %66 = vector.shape_cast %3 : vector<1x128xi1> to vector<1x128xi1>
    %67 = vector.broadcast %66 : vector<1x128xi1> to vector<16x128xi1>
    %68 = vector.broadcast %cst_26 : f32 to vector<16x128xf32>
    %69 = arith.select %67, %65, %68 : vector<16x128xi1>, vector<16x128xf32>
    %70 = arith.mulf %69, %69 : vector<16x128xf32>
    %cst_27 = arith.constant dense<0.000000e+00> : vector<16xf32>
    %71 = vector.multi_reduction <add>, %70, %cst_27 [1] : vector<16x128xf32> to vector<16xf32>
    %72 = vector.shape_cast %71 : vector<16xf32> to vector<16x1xf32>
    %cst_28 = arith.constant 3.125000e-02 : f32
    %73 = vector.broadcast %cst_28 : f32 to vector<16x1xf32>
    %74 = arith.mulf %72, %73 : vector<16x1xf32>
    %cst_29 = arith.constant 9.99999974E-6 : f32
    %75 = vector.broadcast %cst_29 : f32 to vector<16x1xf32>
    %76 = arith.addf %74, %75 : vector<16x1xf32>
    %77 = math.rsqrt %76 : vector<16x1xf32>
    %78 = vector.broadcast %77 : vector<16x1xf32> to vector<16x128xf32>
    %79 = arith.mulf %69, %78 : vector<16x128xf32>
    %80 = vector.broadcast %54 : vector<1x128xf32> to vector<16x128xf32>
    %81 = arith.mulf %79, %80 : vector<16x128xf32>
    %82 = vector.broadcast %55 : vector<1x128xf32> to vector<16x128xf32>
    %83 = arith.addf %81, %82 : vector<16x128xf32>
    %c3 = arith.constant 3 : index
    %c0_30 = arith.constant 0 : index
    %c0_31 = arith.constant 0 : index
    %84 = vector.load %arg2[%c3, %c0_30, %c0_31] : memref<6x128x128xf32, #tpu.memory_space<vmem>>, vector<1x128x128xf32>
    %85 = vector.shape_cast %84 : vector<1x128x128xf32> to vector<128x128xf32>
    %cst_32 = arith.constant dense<0.000000e+00> : vector<16x128xf32>
    %86 = tpu.matmul %83, %85, %cst_32 {dimension_numbers = #tpu.dot_dimension_numbers<[1], [0], [0], [1], [0, 0, 1, 1], [], []>} : vector<16x128xf32>, vector<128x128xf32>, vector<16x128xf32> -> vector<16x128xf32>
    %87 = vector.extract_strided_slice %0 {offsets = [3, 0], sizes = [1, 128], strides = [1, 1]} : vector<8x128xf32> to vector<1x128xf32>
    %88 = vector.broadcast %87 : vector<1x128xf32> to vector<16x128xf32>
    %89 = arith.addf %86, %88 : vector<16x128xf32>
    %90 = arith.mulf %89, %89 : vector<16x128xf32>
    %91 = arith.mulf %89, %90 : vector<16x128xf32>
    %cst_33 = arith.constant 4.471500e-02 : f32
    %92 = vector.broadcast %cst_33 : f32 to vector<16x128xf32>
    %93 = arith.mulf %92, %91 : vector<16x128xf32>
    %94 = arith.addf %89, %93 : vector<16x128xf32>
    %cst_34 = arith.constant 0.797884583 : f32
    %95 = vector.broadcast %cst_34 : f32 to vector<16x128xf32>
    %96 = arith.mulf %95, %94 : vector<16x128xf32>
    %97 = math.tanh %96 : vector<16x128xf32>
    %cst_35 = arith.constant 1.000000e+00 : f32
    %98 = vector.broadcast %cst_35 : f32 to vector<16x128xf32>
    %99 = arith.addf %98, %97 : vector<16x128xf32>
    %cst_36 = arith.constant 5.000000e-01 : f32
    %100 = vector.broadcast %cst_36 : f32 to vector<16x128xf32>
    %101 = arith.mulf %100, %99 : vector<16x128xf32>
    %102 = arith.mulf %89, %101 : vector<16x128xf32>
    %c4 = arith.constant 4 : index
    %c0_37 = arith.constant 0 : index
    %c0_38 = arith.constant 0 : index
    %103 = vector.load %arg2[%c4, %c0_37, %c0_38] : memref<6x128x128xf32, #tpu.memory_space<vmem>>, vector<1x128x128xf32>
    %104 = vector.shape_cast %103 : vector<1x128x128xf32> to vector<128x128xf32>
    %cst_39 = arith.constant dense<0.000000e+00> : vector<16x128xf32>
    %105 = tpu.matmul %102, %104, %cst_39 {dimension_numbers = #tpu.dot_dimension_numbers<[1], [0], [0], [1], [0, 0, 1, 1], [], []>} : vector<16x128xf32>, vector<128x128xf32>, vector<16x128xf32> -> vector<16x128xf32>
    %106 = vector.extract_strided_slice %0 {offsets = [4, 0], sizes = [1, 128], strides = [1, 1]} : vector<8x128xf32> to vector<1x128xf32>
    %107 = vector.broadcast %106 : vector<1x128xf32> to vector<16x128xf32>
    %108 = arith.addf %105, %107 : vector<16x128xf32>
    %109 = arith.addf %83, %108 : vector<16x128xf32>
    %110 = vector.extract_strided_slice %0 {offsets = [5, 0], sizes = [1, 128], strides = [1, 1]} : vector<8x128xf32> to vector<1x128xf32>
    %111 = vector.extract_strided_slice %0 {offsets = [6, 0], sizes = [1, 128], strides = [1, 1]} : vector<8x128xf32> to vector<1x128xf32>
    %cst_40 = arith.constant 0.000000e+00 : f32
    %112 = vector.shape_cast %3 : vector<1x128xi1> to vector<1x128xi1>
    %113 = vector.broadcast %112 : vector<1x128xi1> to vector<16x128xi1>
    %114 = vector.broadcast %cst_40 : f32 to vector<16x128xf32>
    %115 = arith.select %113, %109, %114 : vector<16x128xi1>, vector<16x128xf32>
    %cst_41 = arith.constant dense<0.000000e+00> : vector<16xf32>
    %116 = vector.multi_reduction <add>, %115, %cst_41 [1] : vector<16x128xf32> to vector<16xf32>
    %117 = vector.shape_cast %116 : vector<16xf32> to vector<16x1xf32>
    %cst_42 = arith.constant 3.125000e-02 : f32
    %118 = vector.broadcast %cst_42 : f32 to vector<16x1xf32>
    %119 = arith.mulf %117, %118 : vector<16x1xf32>
    %120 = vector.broadcast %119 : vector<16x1xf32> to vector<16x128xf32>
    %121 = arith.subf %115, %120 : vector<16x128xf32>
    %cst_43 = arith.constant 0.000000e+00 : f32
    %122 = vector.shape_cast %3 : vector<1x128xi1> to vector<1x128xi1>
    %123 = vector.broadcast %122 : vector<1x128xi1> to vector<16x128xi1>
    %124 = vector.broadcast %cst_43 : f32 to vector<16x128xf32>
    %125 = arith.select %123, %121, %124 : vector<16x128xi1>, vector<16x128xf32>
    %126 = arith.mulf %125, %125 : vector<16x128xf32>
    %cst_44 = arith.constant dense<0.000000e+00> : vector<16xf32>
    %127 = vector.multi_reduction <add>, %126, %cst_44 [1] : vector<16x128xf32> to vector<16xf32>
    %128 = vector.shape_cast %127 : vector<16xf32> to vector<16x1xf32>
    %cst_45 = arith.constant 3.125000e-02 : f32
    %129 = vector.broadcast %cst_45 : f32 to vector<16x1xf32>
    %130 = arith.mulf %128, %129 : vector<16x1xf32>
    %cst_46 = arith.constant 9.99999974E-6 : f32
    %131 = vector.broadcast %cst_46 : f32 to vector<16x1xf32>
    %132 = arith.addf %130, %131 : vector<16x1xf32>
    %133 = math.rsqrt %132 : vector<16x1xf32>
    %134 = vector.broadcast %133 : vector<16x1xf32> to vector<16x128xf32>
    %135 = arith.mulf %125, %134 : vector<16x128xf32>
    %136 = vector.broadcast %110 : vector<1x128xf32> to vector<16x128xf32>
    %137 = arith.mulf %135, %136 : vector<16x128xf32>
    %138 = vector.broadcast %111 : vector<1x128xf32> to vector<16x128xf32>
    %139 = arith.addf %137, %138 : vector<16x128xf32>
    %140 = vector.shape_cast %139 : vector<16x128xf32> to vector<2x8x128xf32>
    %cst_47 = arith.constant dense<0.000000e+00> : vector<2x128xf32>
    %141 = vector.multi_reduction <add>, %140, %cst_47 [1] : vector<2x8x128xf32> to vector<2x128xf32>
    %cst_48 = arith.constant 8.000000e+00 : f32
    %142 = vector.broadcast %cst_48 : f32 to vector<2x128xf32>
    %143 = arith.divf %141, %142 : vector<2x128xf32>
    %c5 = arith.constant 5 : index
    %c0_49 = arith.constant 0 : index
    %c0_50 = arith.constant 0 : index
    %144 = vector.load %arg2[%c5, %c0_49, %c0_50] : memref<6x128x128xf32, #tpu.memory_space<vmem>>, vector<1x128x128xf32>
    %145 = vector.shape_cast %144 : vector<1x128x128xf32> to vector<128x128xf32>
    %cst_51 = arith.constant dense<0.000000e+00> : vector<2x128xf32>
    %146 = tpu.matmul %143, %145, %cst_51 {dimension_numbers = #tpu.dot_dimension_numbers<[1], [0], [0], [1], [0, 0, 1, 1], [], []>} : vector<2x128xf32>, vector<128x128xf32>, vector<2x128xf32> -> vector<2x128xf32>
    %147 = vector.extract_strided_slice %0 {offsets = [7, 0], sizes = [1, 128], strides = [1, 1]} : vector<8x128xf32> to vector<1x128xf32>
    %148 = vector.broadcast %147 : vector<1x128xf32> to vector<2x128xf32>
    %149 = arith.addf %146, %148 : vector<2x128xf32>
    %c0_52 = arith.constant 0 : index
    %c0_53 = arith.constant 0 : index
    %150 = vector.load %arg4[%c0_52, %c0_53] : memref<2x128xf32, #tpu.memory_space<vmem>>, vector<2x128xf32>
    tpu.vector_store %arg4[%c0_52, %c0_53], %149 {strides = array<i32>} : memref<2x128xf32, #tpu.memory_space<vmem>>, vector<2x128xf32>,
    return
  }
  func.func @transform_0(%arg0: i32) -> (i32, i32, i32) {
    %c0_i32 = arith.constant 0 : i32
    %c0_i32_0 = arith.constant 0 : i32
    %c0_i32_1 = arith.constant 0 : i32
    return %arg0, %c0_i32, %c0_i32_0 : i32, i32, i32
  }
  func.func @transform_1(%arg0: i32) -> (i32, i32, i32) {
    %c0_i32 = arith.constant 0 : i32
    %c0_i32_0 = arith.constant 0 : i32
    %c0_i32_1 = arith.constant 0 : i32
    %c0_i32_2 = arith.constant 0 : i32
    return %c0_i32, %c0_i32_0, %c0_i32_1 : i32, i32, i32
  }
  func.func @transform_2(%arg0: i32) -> (i32, i32) {
    %c0_i32 = arith.constant 0 : i32
    %c0_i32_0 = arith.constant 0 : i32
    %c0_i32_1 = arith.constant 0 : i32
    return %c0_i32, %c0_i32_0 : i32, i32
  }
  func.func @transform_3(%arg0: i32) -> (i32, i32) {
    %c0_i32 = arith.constant 0 : i32
    %c0_i32_0 = arith.constant 0 : i32
    return %arg0, %c0_i32 : i32, i32
  }
}

</mosaic_0001>

<bundles_post_ra>
// kernel: tpu_custom_call.1
= control target key start
LH: loop header
LB: loop body
LE: loop exit
PB: predicated region body
PF: predicated region fallthrough
CT: control target
= control target key end

     0   :  { %8 = vsyncpa [#allocation3], 0  ;;  %s882_s0 = inlined_call_operand.hbm [shape: f32[2,8,128], index: 0, kind: input, shape index: {}]   ;;  %s883_s1 = inlined_call_operand.hbm [shape: f32[6,128,128], index: 1, kind: input, shape index: {}]   ;;  %s884_s2 = inlined_call_operand.hbm [shape: f32[8,128], index: 2, kind: input, shape index: {}]   ;;  %s885_s3 = inlined_call_operand.hbm [shape: f32[2,128], index: 3, kind: output, shape index: {}]  }
   0x1   :  { %9 = vsyncpa [#allocation6], 0 }
   0x2   :  { %10 = vsyncpa [#allocation4], 0  ;;  %s28_s14 = sshll.u32 %s883_s1, 4  ;;  %s764_s15 = smov [#allocation5]   ;;  %s29_s14 = int_to_ptr.hbm [resolvable:$true] %s28_s14 }
   0x3   :  { %s30_s16 = sshll.u32 %s764_s15, 4  ;;  %s15_s19 = sshll.u32 %s882_s0, 4  ;;  %s31_s16 = int_to_ptr.vmem [resolvable:$true] %s30_s16  ;;  %s16_s19 = int_to_ptr.hbm [resolvable:$true] %s15_s19 }
   0x4   :  { %s765_s20 = smov 128   ;;  %s766_s21 = smov 8  }
   0x5   :  { %36 = dma.hbm_to_vmem [thread:$0]  %s29_s14, 12288, %s31_s16, [#allocation6], %s765_s20, %s765_s20, %s766_s21  }
   0x6   :  { %s767_s22 = smov [#allocation2]   ;;  %s42_s26 = sshll.u32 %s884_s2, 4  ;;  %s43_s26 = int_to_ptr.hbm [resolvable:$true] %s42_s26 }
   0x7   :  { %s17_s23 = sshll.u32 %s767_s22, 4  ;;  %s768_s1 = smov [#allocation7]   ;;  %s18_s23 = int_to_ptr.vmem [resolvable:$true] %s17_s23 }
   0x8   :  { %23 = dma.hbm_to_vmem [thread:$0]  %s16_s19, 256, %s18_s23, [#allocation3], %s765_s20, %s765_s20, %s766_s21  }
   0x9   :  { %s44_s27 = sshll.u32 %s768_s1, 4  ;;  %s45_s27 = int_to_ptr.vmem [resolvable:$true] %s44_s27 }
   0xa   :  { %47 = dma.hbm_to_vmem [thread:$0]  %s43_s26, 128, %s45_s27, [#allocation6]  }
   0xb   :  { %758 = dma.done.wait [#allocation3], 256  }
   0xc   :  { %759 = vsyncadd [#allocation3], 4294967040 }
   0xd   :  { %760 = dma.done.wait [#allocation6], 12416  }
   0xe   :  { %761 = vsyncadd [#allocation6], 4294954880  ;;  %v81_v0 = vld [vmem:[#allocation5 + $0x78] sm:$0xff]  ;;  %v80_v1 = vld [vmem:[#allocation5 + $0x70] sm:$0xff]  ;;  %s769_s0 = smov 96   ;;  %s770_s2 = smov 64  }
   0xf   :  { %83 = vmatpush.msra.mxu0 %v81_v0  ;;  %v79_v2 = vld [vmem:[#allocation5 + $0x68] sm:$0xff]  ;;  %v78_v3 = vld [vmem:[#allocation5 + $0x60] sm:$0xff]  ;;  %v77_v4 = vld [vmem:[#allocation5 + $0x58] sm:$0xff]  ;;  %vm167_vm0 = vcmask 261120   ;;  %vm221_vm1 = vcmask 64512   ;;  %s772_s28 = smov [#allocation8]  }
  0x10   :  { %v76_v5 = vld [vmem:[#allocation5 + $0x50] sm:$0xff]  ;;  %v140_v6 = vld [vmem:[#allocation5 + $0xf8] sm:$0xff]  ;;  %v75_v8 = vld [vmem:[#allocation5 + $0x48] sm:$0xff]  ;;  %s606_s29 = sshll.u32 %s772_s28, 4  ;;  %s608_s5 = sshll.u32 %s885_s3, 4  ;;  %s607_s29 = int_to_ptr.vmem [resolvable:$true] %s606_s29  ;;  %s609_s5 = int_to_ptr.hbm [resolvable:$true] %s608_s5 }
  0x11   :  { %84 = vmatpush.msra.mxu0 %v80_v1  ;;  %v139_v7 = vld [vmem:[#allocation5 + $0xf0] sm:$0xff]  ;;  %141 = vmatpush.msra.mxu1 %v140_v6  ;;  %v138_v9 = vld [vmem:[#allocation5 + $0xe8] sm:$0xff]  ;;  %v74_v10 = vld [vmem:[#allocation5 + $0x40] sm:$0xff] }
  0x12   :  { %v73_v11 = vld [vmem:[#allocation5 + $0x38] sm:$0xff]  ;;  %v72_v12 = vld [vmem:[#allocation5 + $0x30] sm:$0xff]  ;;  %v71_v13 = vld [vmem:[#allocation5 + $0x28] sm:$0xff] }
  0x13   :  { %85 = vmatpush.msra.mxu0 %v79_v2  ;;  %142 = vmatpush.msra.mxu1 %v139_v7  ;;  %v70_v14 = vld [vmem:[#allocation5 + $0x20] sm:$0xff]  ;;  %v69_v15 = vld [vmem:[#allocation5 + $0x18] sm:$0xff]  ;;  %v68_v16 = vld [vmem:[#allocation5 + $0x10] sm:$0xff] }
  0x14   :  { %v67_v17 = vld [vmem:[#allocation5 + $0x8] sm:$0xff]  ;;  %v66_v18 = vld [vmem:[#allocation5] sm:$0xff]  ;;  %v64_v19 = vld [vmem:[#allocation2] sm:$0xff] }
  0x15   :  { %86 = vmatpush.msra.mxu0 %v78_v3  ;;  %143 = vmatpush.msra.mxu1 %v138_v9  ;;  %v65_v20 = vld [vmem:[#allocation2 + $0x8] sm:$0xff]  ;;  %v137_v21 = vld [vmem:[#allocation5 + $0xe0] sm:$0xff]  ;;  %v135_v23 = vld [vmem:[#allocation5 + $0xd0] sm:$0xff] }
  0x16   :  { %v136_v22 = vld [vmem:[#allocation5 + $0xd8] sm:$0xff]  ;;  %v134_v24 = vld [vmem:[#allocation5 + $0xc8] sm:$0xff]  ;;  %v133_v25 = vld [vmem:[#allocation5 + $0xc0] sm:$0xff] }
  0x17   :  { %87 = vmatpush.msra.mxu0 %v77_v4  ;;  %144 = vmatpush.msra.mxu1 %v137_v21  ;;  %v132_v26 = vld [vmem:[#allocation5 + $0xb8] sm:$0xff]  ;;  %v131_v27 = vld [vmem:[#allocation5 + $0xb0] sm:$0xff]  ;;  %v130_v28 = vld [vmem:[#allocation5 + $0xa8] sm:$0xff] }
  0x18   :  { %v129_v29 = vld [vmem:[#allocation5 + $0xa0] sm:$0xff]  ;;  %v128_v30 = vld [vmem:[#allocation5 + $0x98] sm:$0xff]  ;;  %v127_v31 = vld [vmem:[#allocation5 + $0x90] sm:$0xff] }
  0x19   :  { %88 = vmatpush.msra.mxu0 %v76_v5  ;;  %145 = vmatpush.msra.mxu1 %v136_v22  ;;  %v126_v32 = vld [vmem:[#allocation5 + $0x88] sm:$0xff]  ;;  %v125_v33 = vld [vmem:[#allocation5 + $0x80] sm:$0xff] }
  0x1a   :  { %v802_v34 = vld [vmem:[#allocation7] sm:$0xff] }
  0x1b   :  { %89 = vmatpush.msra.mxu0 %v75_v8  ;;  %146 = vmatpush.msra.mxu1 %v135_v23  ;;  %v82_v35 = vperm.slane %v802_v34, 0 }
  0x1d   :  { %90 = vmatpush.msra.mxu0 %v74_v10  ;;  %147 = vmatpush.msra.mxu1 %v134_v24 }
  0x1f   :  { %91 = vmatpush.msra.mxu0 %v73_v11  ;;  %148 = vmatpush.msra.mxu1 %v133_v25 }
  0x21   :  { %92 = vmatpush.msra.mxu0 %v72_v12  ;;  %149 = vmatpush.msra.mxu1 %v132_v26 }
  0x23   :  { %93 = vmatpush.msra.mxu0 %v71_v13  ;;  %150 = vmatpush.msra.mxu1 %v131_v27 }
  0x25   :  { %94 = vmatpush.msra.mxu0 %v70_v14  ;;  %151 = vmatpush.msra.mxu1 %v130_v28  ;;  %v61_v28 = vlaneseq }
  0x27   :  { %95 = vmatpush.msra.mxu0 %v69_v15  ;;  %152 = vmatpush.msra.mxu1 %v129_v29  ;;  %v823_v29 = vand.u32 127, %v61_v28 }
  0x29   :  { %96 = vmatpush.msra.mxu0 %v68_v16  ;;  %153 = vmatpush.msra.mxu1 %v128_v30  ;;  %v300_v16 = vld [vmem:[#allocation5 + $0x118] sm:$0xff]  ;;  %vm63_vm2 = vcmp.lt.s32.totalorder %v823_v29, 32  ;;  %v567_v29 = vld [vmem:[#allocation5 + $0x2c8] sm:$0xff] }
  0x2b   :  { %97 = vmatpush.msra.mxu0 %v67_v17  ;;  %154 = vmatpush.msra.mxu1 %v127_v31  ;;  %v299_v17 = vld [vmem:[#allocation5 + $0x110] sm:$0xff] }
  0x2d   :  { %98 = vmatpush.msra.mxu0 %v66_v18  ;;  %155 = vmatpush.msra.mxu1 %v126_v32  ;;  %v298_v18 = vld [vmem:[#allocation5 + $0x108] sm:$0xff] }
  0x2e   :  { %99 = vmatmul.f32.vlgmr.msra.gmra.mxu0 %v64_v19  ;;  %v297_v19 = vld [vmem:[#allocation5 + $0x100] sm:$0xff] }
  0x2f   :  { %156 = vmatpush.msra.mxu1 %v125_v33 }
  0x36   :  { %102 = vmatmul.f32.gmra.mxu0 %v65_v20 }
  0xab   :  { %v100_v36 = vpop.f32.mrf.mxu0 }
  0xac   :  { %v101_v37 = vadd.f32 %v100_v36, %v82_v35 }
  0xae   :  { %v106_v38 = vmul.f32 %v101_v37, %v101_v37 }
  0xb0   :  { %v108_v39 = vmul.f32 %v106_v38, %v101_v37  ;;  %v399_v38 = vld [vmem:[#allocation5 + $0x1f0] sm:$0xff] }
  0xb2   :  { %v110_v40 = vmul.f32 0.044715, %v108_v39 }
  0xb3   :  { %v103_v41 = vpop.f32.mrf.mxu0 }
  0xb4   :  { %v104_v42 = vadd.f32 %v103_v41, %v82_v35  ;;  %v112_v43 = vadd.f32 %v110_v40, %v101_v37 }
  0xb6   :  { %v107_v44 = vmul.f32 %v104_v42, %v104_v42  ;;  %v114_v45 = vmul.f32 0.7978846, %v112_v43 }
  0xb8   :  { %v109_v46 = vmul.f32 %v107_v44, %v104_v42  ;;  %636 = vtanh.f32 %v114_v45 }
  0xba   :  { %v111_v47 = vmul.f32 0.044715, %v109_v46 }
  0xbc   :  { %v113_v48 = vadd.f32 %v111_v47, %v104_v42 }
  0xbe   :  { %v637_v49 = vpop.eup %636  ;;  %v115_v50 = vmul.f32 0.7978846, %v113_v48 }
  0xbf   :  { %v118_v51 = vadd.f32 1.0, %v637_v49  ;;  %v398_v49 = vld [vmem:[#allocation5 + $0x1e8] sm:$0xff] }
  0xc0   :  { %638 = vtanh.f32 %v115_v50  ;;  %v397_v50 = vld [vmem:[#allocation5 + $0x1e0] sm:$0xff] }
  0xc1   :  { %v120_v52 = vmul.f32 0.5, %v118_v51  ;;  %v396_v51 = vld [vmem:[#allocation5 + $0x1d8] sm:$0xff] }
  0xc3   :  { %v805_v53 = vmul.f32 %v120_v52, %v101_v37  ;;  %v400_v37 = vld [vmem:[#allocation5 + $0x1f8] sm:$0xff]  ;;  %v395_v52 = vld [vmem:[#allocation5 + $0x1d0] sm:$0xff] }
  0xc5   :  { %157 = vmatmul.f32.vlgmr.msra.gmra.mxu1 %v805_v53 }
  0xc6   :  { %v639_v54 = vpop.eup %638 }
  0xc7   :  { %v119_v55 = vadd.f32 1.0, %v639_v54  ;;  %v393_v54 = vld [vmem:[#allocation5 + $0x1c0] sm:$0xff] }
  0xc9   :  { %v121_v56 = vmul.f32 0.5, %v119_v55  ;;  %v392_v55 = vld [vmem:[#allocation5 + $0x1b8] sm:$0xff] }
  0xcb   :  { %v808_v57 = vmul.f32 %v121_v56, %v104_v42  ;;  %v391_v56 = vld [vmem:[#allocation5 + $0x1b0] sm:$0xff] }
  0xcd   :  { %160 = vmatmul.f32.gmra.mxu1 %v808_v57 }
 0x142   :  { %v158_v58 = vpop.f32.mrf.mxu1 }
 0x143   :  { %165 = vrot.lane.b32.xlu0 %v158_v58, %s769_s0 }
 0x14a   :  { %v161_v59 = vpop.f32.mrf.mxu1 }
 0x14b   :  { %193 = vrot.lane.b32.xlu0 %v161_v59, %s769_s0 }
 0x153   :  { %244 = vrot.lane.b32.xlu0 %v158_v58, %s770_s2 }
 0x1b5   :  { %v166_v60 = vpop.permute.xlu0 %165 }
 0x1b6   :  { %619 = vmatpush.xpose.msk.msra.mxu2 %vm167_vm0, %v166_v60  ;;  %v387_v60 = vld [vmem:[#allocation5 + $0x190] sm:$0xff] }
 0x1b9   :  { %620 = vmatmul.msk.f32.vlgmr.msra.gmra.mxu2 %vm167_vm0, %v158_v58  ;;  %v389_v58 = vld [vmem:[#allocation5 + $0x1a0] sm:$0xff] }
 0x1bd   :  { %v194_v61 = vpop.permute.xlu0 %193 }
 0x1be   :  { %621 = vmatpush.xpose.msk.msra.mxu3 %vm167_vm0, %v194_v61  ;;  %v386_v61 = vld [vmem:[#allocation5 + $0x188] sm:$0xff] }
 0x1c1   :  { %622 = vmatmul.msk.f32.vlgmr.msra.gmra.mxu3 %vm167_vm0, %v161_v59 }
 0x1c5   :  { %v245_v62 = vpop.permute.xlu0 %244 }
 0x1c6   :  { %265 = vmatpush.msrb.mxu2 %v245_v62  ;;  %v385_v62 = vld [vmem:[#allocation5 + $0x180] sm:$0xff] }
 0x1c8   :  { %319 = vmatpush.msra.mxu2 %v300_v16  ;;  %v378_v16 = vperm.slane %v802_v34, 1 }
 0x1ca   :  { %320 = vmatpush.msra.mxu2 %v299_v17 }
 0x1cc   :  { %321 = vmatpush.msra.mxu2 %v298_v18 }
 0x1ce   :  { %322 = vmatpush.msra.mxu2 %v297_v19 }
 0x23c   :  { %v189_v63 = vpop.f32.mrf.mxu2 }
 0x23d   :  { %v219_v0 = vmul.f32 0.17677669, %v189_v63 }
 0x23f   :  { %v222_v1 = vsel %vm221_vm1, %v219_v0, -inf }
 0x240   :  { %223 = vmax.xlane.f32.xlu1 %v222_v1 }
 0x244   :  { %v216_v2 = vpop.f32.mrf.mxu3 }
 0x245   :  { %v220_v3 = vmul.f32 0.17677669, %v216_v2  ;;  %v459_v2 = vld [vmem:[#allocation5 + $0x278] sm:$0xff] }
 0x247   :  { %v225_v4 = vsel %vm221_vm1, %v220_v3, -inf }
 0x248   :  { %226 = vmax.xlane.f32.xlu1 %v225_v4  ;;  %v457_v4 = vld [vmem:[#allocation5 + $0x268] sm:$0xff] }
 0x261   :  { %270 = vrot.lane.b32.xlu1 %v161_v59, %s770_s2  ;;  %v388_v59 = vld [vmem:[#allocation5 + $0x198] sm:$0xff] }
 0x2b3   :  { %v224_v5 = vpop.xlane.xlu1 %223 }
 0x2b4   :  { %v228_v6 = vsub.f32 %v219_v0, %v224_v5 }
 0x2b6   :  { %v230_v7 = vmul.f32 1.442695, %v228_v6 }
 0x2b8   :  { %640 = vpow2.f32 %v230_v7 }
 0x2bb   :  { %v227_v8 = vpop.xlane.xlu1 %226 }
 0x2bc   :  { %v229_v9 = vsub.f32 %v220_v3, %v227_v8  ;;  %v458_v3 = vld [vmem:[#allocation5 + $0x270] sm:$0xff] }
 0x2be   :  { %v641_v10 = vpop.eup %640  ;;  %v232_v11 = vmul.f32 1.442695, %v229_v9 }
 0x2bf   :  { %v234_v12 = vsel %vm221_vm1, %v641_v10, 0.0 }
 0x2c0   :  { %642 = vpow2.f32 %v232_v11  ;;  %235 = vadd.xlane.f32.xlu2 %v234_v12 }
 0x2c6   :  { %v643_v13 = vpop.eup %642 }
 0x2c7   :  { %v237_v14 = vsel %vm221_vm1, %v643_v13, 0.0 }
 0x2c8   :  { %238 = vadd.xlane.f32.xlu2 %v237_v14 }
 0x2d3   :  { %v271_v15 = vpop.permute.xlu1 %270 }
 0x2d4   :  { %291 = vmatpush.msrb.mxu3 %v271_v15 }
 0x2d6   :  { %402 = vmatpush.msra.mxu3 %v400_v37  ;;  %v451_v37 = vld [vmem:[#allocation5 + $0x238] sm:$0xff] }
 0x2d8   :  { %403 = vmatpush.msra.mxu3 %v399_v38  ;;  %v450_v38 = vld [vmem:[#allocation5 + $0x230] sm:$0xff] }
 0x2da   :  { %404 = vmatpush.msra.mxu3 %v398_v49 }
 0x2dc   :  { %405 = vmatpush.msra.mxu3 %v397_v50 }
 0x2de   :  { %406 = vmatpush.msra.mxu3 %v396_v51 }
 0x2e0   :  { %407 = vmatpush.msra.mxu3 %v395_v52 }
 0x333   :  { %v236_v20 = vpop.xlane.xlu2 %235 }
 0x334   :  { %644 = vrcp.f32 %v236_v20  ;;  %v381_v20 = vperm.slane %v802_v34, 2 }
 0x33a   :  { %v645_v21 = vpop.eup %644 }
 0x33b   :  { %v239_v22 = vpop.xlane.xlu2 %238  ;;  %v242_v23 = vmul.f32 %v645_v21, %v641_v10 }
 0x33c   :  { %646 = vrcp.f32 %v239_v22 }
 0x33d   :  { %623 = vmatmul.msk.f32.vlgmr.msrb.gmra.mxu2 %vm221_vm1, %v242_v23 }
 0x33e   :  { %461 = vmatpush.msrb.mxu2 %v459_v2 }
 0x340   :  { %462 = vmatpush.msrb.mxu2 %v458_v3 }
 0x342   :  { %v647_v24 = vpop.eup %646  ;;  %463 = vmatpush.msrb.mxu2 %v457_v4  ;;  %v460_v4 = vperm.slane %v802_v34, 4 }
 0x343   :  { %v243_v25 = vmul.f32 %v647_v24, %v643_v13 }
 0x345   :  { %624 = vmatmul.msk.f32.vlgmr.msrb.gmra.mxu3 %vm221_vm1, %v243_v25 }
 0x3c0   :  { %v267_v26 = vpop.f32.mrf.mxu2 }
 0x3c1   :  { %625 = vmatmul.msk.f32.vlgmr.msra.gmra.mxu2 %vm167_vm0, %v267_v26 }
 0x3c8   :  { %v293_v27 = vpop.f32.mrf.mxu3 }
 0x3c9   :  { %626 = vmatmul.msk.f32.gmra.mxu2 %vm167_vm0, %v293_v27  ;;  %vm577_vm0 = vcmask 1041409  }
 0x444   :  { %v324_v30 = vpop.f32.mrf.mxu2 }
 0x445   :  { %v330_v31 = vadd.f32 %v324_v30, %v805_v53  ;;  %v394_v53 = vld [vmem:[#allocation5 + $0x1c8] sm:$0xff] }
 0x446   :  { %408 = vmatpush.msra.mxu3 %v394_v53 }
 0x447   :  { %v334_v32 = vsel %vm63_vm2, %v330_v31, 0.0  ;;  %v456_v31 = vld [vmem:[#allocation5 + $0x260] sm:$0xff] }
 0x448   :  { %336 = vadd.xlane.f32.xlu2 %v334_v32  ;;  %409 = vmatpush.msra.mxu3 %v393_v54 }
 0x449   :  { %464 = vmatpush.msrb.mxu2 %v456_v31 }
 0x44a   :  { %410 = vmatpush.msra.mxu3 %v392_v55 }
 0x44c   :  { %v327_v33 = vpop.f32.mrf.mxu2  ;;  %411 = vmatpush.msra.mxu3 %v391_v56 }
 0x44d   :  { %v331_v35 = vadd.f32 %v327_v33, %v808_v57  ;;  %v390_v57 = vld [vmem:[#allocation5 + $0x1a8] sm:$0xff]  ;;  %v454_v33 = vld [vmem:[#allocation5 + $0x250] sm:$0xff] }
 0x44e   :  { %412 = vmatpush.msra.mxu3 %v390_v57 }
 0x44f   :  { %v335_v36 = vsel %vm63_vm2, %v331_v35, 0.0  ;;  %v453_v35 = vld [vmem:[#allocation5 + $0x248] sm:$0xff] }
 0x450   :  { %338 = vadd.xlane.f32.xlu0 %v335_v36  ;;  %413 = vmatpush.msra.mxu3 %v389_v58 }
 0x452   :  { %414 = vmatpush.msra.mxu3 %v388_v59 }
 0x454   :  { %415 = vmatpush.msra.mxu3 %v387_v60 }
 0x456   :  { %416 = vmatpush.msra.mxu3 %v386_v61 }
 0x458   :  { %417 = vmatpush.msra.mxu3 %v385_v62 }
 0x4bb   :  { %v337_v39 = vpop.xlane.xlu2 %336 }
 0x4bc   :  { %v340_v40 = vmul.f32 0.03125, %v337_v39  ;;  %v449_v39 = vld [vmem:[#allocation5 + $0x228] sm:$0xff] }
 0x4be   :  { %v342_v41 = vsub.f32 %v334_v32, %v340_v40  ;;  %v455_v32 = vld [vmem:[#allocation5 + $0x258] sm:$0xff]  ;;  %v448_v40 = vld [vmem:[#allocation5 + $0x220] sm:$0xff] }
 0x4bf   :  { %465 = vmatpush.msrb.mxu2 %v455_v32  ;;  %v566_v32 = vld [vmem:[#allocation5 + $0x2c0] sm:$0xff] }
 0x4c0   :  { %v834_v42 = vsel %vm63_vm2, %v342_v41, 0.0  ;;  %v447_v41 = vld [vmem:[#allocation5 + $0x218] sm:$0xff] }
 0x4c1   :  { %v346_v43 = vmul.f32 %v834_v42, %v834_v42  ;;  %466 = vmatpush.msrb.mxu2 %v454_v33 }
 0x4c3   :  { %348 = vadd.xlane.f32.xlu2 %v346_v43  ;;  %v339_v44 = vpop.xlane.xlu0 %338  ;;  %467 = vmatpush.msrb.mxu2 %v453_v35  ;;  %v445_v43 = vld [vmem:[#allocation5 + $0x208] sm:$0xff]  ;;  %v565_v35 = vld [vmem:[#allocation5 + $0x2b8] sm:$0xff] }
 0x4c4   :  { %v341_v45 = vmul.f32 0.03125, %v339_v44  ;;  %v444_v44 = vld [vmem:[#allocation5 + $0x200] sm:$0xff] }
 0x4c6   :  { %v343_v46 = vsub.f32 %v335_v36, %v341_v45  ;;  %v452_v36 = vld [vmem:[#allocation5 + $0x240] sm:$0xff]  ;;  %v401_v45 = vperm.slane %v802_v34, 3 }
 0x4c7   :  { %468 = vmatpush.msrb.mxu2 %v452_v36  ;;  %v564_v36 = vld [vmem:[#allocation5 + $0x2b0] sm:$0xff] }
 0x4c8   :  { %v840_v47 = vsel %vm63_vm2, %v343_v46, 0.0 }
 0x4c9   :  { %v347_v48 = vmul.f32 %v840_v47, %v840_v47  ;;  %469 = vmatpush.msrb.mxu2 %v451_v37  ;;  %v563_v37 = vld [vmem:[#allocation5 + $0x2a8] sm:$0xff] }
 0x4cb   :  { %350 = vadd.xlane.f32.xlu2 %v347_v48  ;;  %470 = vmatpush.msrb.mxu2 %v450_v38 }
 0x4cd   :  { %471 = vmatpush.msrb.mxu2 %v449_v39  ;;  %v562_v39 = vld [vmem:[#allocation5 + $0x2a0] sm:$0xff] }
 0x4cf   :  { %472 = vmatpush.msrb.mxu2 %v448_v40 }
 0x4d1   :  { %473 = vmatpush.msrb.mxu2 %v447_v41  ;;  %v561_v41 = vld [vmem:[#allocation5 + $0x298] sm:$0xff] }
 0x536   :  { %v349_v63 = vpop.xlane.xlu2 %348 }
 0x537   :  { %v352_v0 = vmul.f32 0.03125, %v349_v63 }
 0x539   :  { %v354_v1 = vadd.f32 1e-05, %v352_v0 }
 0x53b   :  { %648 = vrsqrt.f32 %v354_v1  ;;  %vm362_vm4 = vweird.f32 %v354_v1 }
 0x53e   :  { %v351_v5 = vpop.xlane.xlu2 %350 }
 0x53f   :  { %v353_v6 = vmul.f32 0.03125, %v351_v5 }
 0x541   :  { %v649_v7 = vpop.eup %648  ;;  %v355_v8 = vadd.f32 1e-05, %v353_v6 }
 0x542   :  { %v357_v9 = vmul.f32 %v649_v7, %v354_v1  ;;  %vm363_vm3 = vweird.f32 %v649_v7 }
 0x543   :  { %650 = vrsqrt.f32 %v355_v8  ;;  %vm364_vm5 = vmor %vm362_vm4, %vm363_vm3  ;;  %vm372_vm7 = vweird.f32 %v355_v8 }
 0x544   :  { %v358_v10 = vmul.f32 %v649_v7, %v357_v9 }
 0x546   :  { %v359_v11 = vmul.f32 0.5, %v358_v10 }
 0x548   :  { %v360_v12 = vsub.f32 1.5, %v359_v11 }
 0x549   :  { %v651_v13 = vpop.eup %650 }
 0x54a   :  { %v361_v14 = vmul.f32 %v649_v7, %v360_v12  ;;  %v367_v15 = vmul.f32 %v651_v13, %v355_v8  ;;  %vm373_vm6 = vweird.f32 %v651_v13 }
 0x54b   :  { %vm374_vm8 = vmor %vm372_vm7, %vm373_vm6 }
 0x54c   :  { %v365_v17 = vsel %vm364_vm5, %v649_v7, %v361_v14  ;;  %v368_v18 = vmul.f32 %v651_v13, %v367_v15 }
 0x54d   :  { %v376_v19 = vmul.f32 %v365_v17, %v834_v42  ;;  %v446_v42 = vld [vmem:[#allocation5 + $0x210] sm:$0xff] }
 0x54e   :  { %v369_v21 = vmul.f32 0.5, %v368_v18  ;;  %474 = vmatpush.msrb.mxu2 %v446_v42 }
 0x54f   :  { %v379_v22 = vmul.f32 %v378_v16, %v376_v19 }
 0x550   :  { %v370_v23 = vsub.f32 1.5, %v369_v21  ;;  %475 = vmatpush.msrb.mxu2 %v445_v43 }
 0x551   :  { %v847_v24 = vadd.f32 %v381_v20, %v379_v22 }
 0x552   :  { %v371_v25 = vmul.f32 %v651_v13, %v370_v23  ;;  %476 = vmatpush.msrb.mxu2 %v444_v44  ;;  %v573_v23 = vld [vmem:[#allocation5 + $0x2f8] sm:$0xff] }
 0x553   :  { %418 = vmatmul.f32.vlgmr.msra.gmra.mxu3 %v847_v24  ;;  %580 = vmatpush.msrb.mxu0 %v573_v23 }
 0x554   :  { %v375_v26 = vsel %vm374_vm8, %v651_v13, %v371_v25  ;;  %v571_v25 = vld [vmem:[#allocation5 + $0x2e8] sm:$0xff] }
 0x555   :  { %v377_v27 = vmul.f32 %v375_v26, %v840_v47  ;;  %v570_v26 = vld [vmem:[#allocation5 + $0x2e0] sm:$0xff] }
 0x557   :  { %v380_v28 = vmul.f32 %v378_v16, %v377_v27  ;;  %v569_v27 = vld [vmem:[#allocation5 + $0x2d8] sm:$0xff] }
 0x559   :  { %v851_v30 = vadd.f32 %v381_v20, %v380_v28  ;;  %v568_v28 = vld [vmem:[#allocation5 + $0x2d0] sm:$0xff] }
 0x55b   :  { %421 = vmatmul.f32.gmra.mxu3 %v851_v30 }
 0x5d6   :  { %v419_v46 = vpop.f32.mrf.mxu3 }
 0x5d7   :  { %v420_v47 = vadd.f32 %v419_v46, %v401_v45 }
 0x5d9   :  { %v425_v48 = vmul.f32 %v420_v47, %v420_v47 }
 0x5db   :  { %v427_v49 = vmul.f32 %v425_v48, %v420_v47 }
 0x5dd   :  { %v429_v50 = vmul.f32 0.044715, %v427_v49  ;;  %v558_v49 = vld [vmem:[#allocation5 + $0x280] sm:$0xff] }
 0x5de   :  { %v422_v51 = vpop.f32.mrf.mxu3 }
 0x5df   :  { %v431_v52 = vadd.f32 %v429_v50, %v420_v47  ;;  %v423_v53 = vadd.f32 %v422_v51, %v401_v45  ;;  %v560_v45 = vld [vmem:[#allocation5 + $0x290] sm:$0xff] }
 0x5e1   :  { %v433_v54 = vmul.f32 0.7978846, %v431_v52  ;;  %v426_v55 = vmul.f32 %v423_v53, %v423_v53 }
 0x5e3   :  { %652 = vtanh.f32 %v433_v54  ;;  %v428_v56 = vmul.f32 %v426_v55, %v423_v53  ;;  %v530_v54 = vperm.slane %v802_v34, 5  ;;  %v771_v55 = vmov 8.0  }
 0x5e5   :  { %v430_v57 = vmul.f32 0.044715, %v428_v56 }
 0x5e7   :  { %v432_v58 = vadd.f32 %v430_v57, %v423_v53 }
 0x5e9   :  { %v653_v59 = vpop.eup %652  ;;  %v434_v60 = vmul.f32 0.7978846, %v432_v58  ;;  %v533_v58 = vperm.slane %v802_v34, 6 }
 0x5ea   :  { %v437_v61 = vadd.f32 1.0, %v653_v59 }
 0x5eb   :  { %654 = vtanh.f32 %v434_v60 }
 0x5ec   :  { %v439_v62 = vmul.f32 0.5, %v437_v61 }
 0x5ee   :  { %v441_v63 = vmul.f32 %v439_v62, %v420_v47  ;;  %v559_v47 = vld [vmem:[#allocation5 + $0x288] sm:$0xff] }
 0x5f0   :  { %477 = vmatmul.f32.vlgmr.msrb.gmra.mxu2 %v441_v63 }
 0x5f1   :  { %v655_v0 = vpop.eup %654 }
 0x5f2   :  { %v438_v1 = vadd.f32 1.0, %v655_v0 }
 0x5f4   :  { %v440_v2 = vmul.f32 0.5, %v438_v1 }
 0x5f6   :  { %v442_v3 = vmul.f32 %v440_v2, %v423_v53 }
 0x5f8   :  { %480 = vmatmul.f32.gmra.mxu2 %v442_v3 }
 0x673   :  { %v478_v5 = vpop.f32.mrf.mxu2 }
 0x674   :  { %v479_v6 = vadd.f32 %v478_v5, %v460_v4 }
 0x676   :  { %v484_v7 = vadd.f32 %v479_v6, %v847_v24  ;;  %v572_v24 = vld [vmem:[#allocation5 + $0x2f0] sm:$0xff] }
 0x677   :  { %581 = vmatpush.msrb.mxu0 %v572_v24 }
 0x678   :  { %v486_v8 = vsel %vm63_vm2, %v484_v7, 0.0 }
 0x679   :  { %488 = vadd.xlane.f32.xlu2 %v486_v8  ;;  %582 = vmatpush.msrb.mxu0 %v571_v25 }
 0x67b   :  { %v481_v9 = vpop.f32.mrf.mxu2  ;;  %583 = vmatpush.msrb.mxu0 %v570_v26  ;;  %v574_v26 = vperm.slane %v802_v34, 7 }
 0x67c   :  { %v482_v10 = vadd.f32 %v481_v9, %v460_v4 }
 0x67d   :  { %584 = vmatpush.msrb.mxu0 %v569_v27 }
 0x67e   :  { %v485_v11 = vadd.f32 %v482_v10, %v851_v30 }
 0x67f   :  { %585 = vmatpush.msrb.mxu0 %v568_v28 }
 0x680   :  { %v487_v12 = vsel %vm63_vm2, %v485_v11, 0.0 }
 0x681   :  { %490 = vadd.xlane.f32.xlu1 %v487_v12  ;;  %586 = vmatpush.msrb.mxu0 %v567_v29 }
 0x683   :  { %587 = vmatpush.msrb.mxu0 %v566_v32 }
 0x685   :  { %588 = vmatpush.msrb.mxu0 %v565_v35 }
 0x687   :  { %589 = vmatpush.msrb.mxu0 %v564_v36 }
 0x689   :  { %590 = vmatpush.msrb.mxu0 %v563_v37 }
 0x68b   :  { %591 = vmatpush.msrb.mxu0 %v562_v39 }
 0x68d   :  { %592 = vmatpush.msrb.mxu0 %v561_v41 }
 0x68f   :  { %593 = vmatpush.msrb.mxu0 %v560_v45 }
 0x691   :  { %594 = vmatpush.msrb.mxu0 %v559_v47 }
 0x693   :  { %595 = vmatpush.msrb.mxu0 %v558_v49 }
 0x6ec   :  { %v489_v13 = vpop.xlane.xlu2 %488 }
 0x6ed   :  { %v492_v14 = vmul.f32 0.03125, %v489_v13 }
 0x6ef   :  { %v494_v15 = vsub.f32 %v486_v8, %v492_v14 }
 0x6f1   :  { %v864_v16 = vsel %vm63_vm2, %v494_v15, 0.0 }
 0x6f2   :  { %v498_v17 = vmul.f32 %v864_v16, %v864_v16 }
 0x6f4   :  { %v491_v18 = vpop.xlane.xlu1 %490  ;;  %500 = vadd.xlane.f32.xlu2 %v498_v17 }
 0x6f5   :  { %v493_v19 = vmul.f32 0.03125, %v491_v18 }
 0x6f7   :  { %v495_v20 = vsub.f32 %v487_v12, %v493_v19 }
 0x6f9   :  { %v870_v21 = vsel %vm63_vm2, %v495_v20, 0.0 }
 0x6fa   :  { %v499_v22 = vmul.f32 %v870_v21, %v870_v21 }
 0x6fc   :  { %502 = vadd.xlane.f32.xlu2 %v499_v22 }
 0x767   :  { %v501_v30 = vpop.xlane.xlu2 %500 }
 0x768   :  { %v504_v31 = vmul.f32 0.03125, %v501_v30 }
 0x76a   :  { %v506_v33 = vadd.f32 1e-05, %v504_v31 }
 0x76c   :  { %656 = vrsqrt.f32 %v506_v33  ;;  %vm514_vm10 = vweird.f32 %v506_v33 }
 0x76f   :  { %v503_v38 = vpop.xlane.xlu2 %502 }
 0x770   :  { %v505_v40 = vmul.f32 0.03125, %v503_v38 }
 0x772   :  { %v657_v42 = vpop.eup %656  ;;  %v507_v43 = vadd.f32 1e-05, %v505_v40 }
 0x773   :  { %v509_v44 = vmul.f32 %v657_v42, %v506_v33  ;;  %vm515_vm9 = vweird.f32 %v657_v42 }
 0x774   :  { %658 = vrsqrt.f32 %v507_v43  ;;  %vm516_vm11 = vmor %vm514_vm10, %vm515_vm9  ;;  %vm524_vm13 = vweird.f32 %v507_v43 }
 0x775   :  { %v510_v46 = vmul.f32 %v657_v42, %v509_v44  ;;  %660 = vrcp.f32 %v771_v55 }
 0x777   :  { %v511_v48 = vmul.f32 0.5, %v510_v46 }
 0x779   :  { %v512_v50 = vsub.f32 1.5, %v511_v48 }
 0x77a   :  { %v659_v51 = vpop.eup %658 }
 0x77b   :  { %v513_v52 = vmul.f32 %v657_v42, %v512_v50  ;;  %v519_v53 = vmul.f32 %v659_v51, %v507_v43  ;;  %vm525_vm12 = vweird.f32 %v659_v51  ;;  %v661_v63 = vpop.eup %660 }
 0x77c   :  { %vm526_vm14 = vmor %vm524_vm13, %vm525_vm12  ;;  %v549_v4 = vmul.f32 8.0, %v661_v63  ;;  %vm553_vm15 = vweird.f32 %v661_v63 }
 0x77d   :  { %v517_v56 = vsel %vm516_vm11, %v657_v42, %v513_v52  ;;  %v520_v57 = vmul.f32 %v659_v51, %v519_v53 }
 0x77e   :  { %v528_v59 = vmul.f32 %v517_v56, %v864_v16  ;;  %v550_v9 = vsub.f32 1.0, %v549_v4 }
 0x77f   :  { %v521_v60 = vmul.f32 0.5, %v520_v57 }
 0x780   :  { %v531_v61 = vmul.f32 %v530_v54, %v528_v59  ;;  %v551_v13 = vmul.f32 %v661_v63, %v550_v9 }
 0x781   :  { %v522_v62 = vsub.f32 1.5, %v521_v60 }
 0x782   :  { %v534_v0 = vadd.f32 %v533_v58, %v531_v61  ;;  %v552_v17 = vadd.f32 %v661_v63, %v551_v13 }
 0x783   :  { %v523_v1 = vmul.f32 %v659_v51, %v522_v62 }
 0x784   :  { %v536_v2 = vrot.slane %v534_v0, 4  ;;  %v554_v22 = vsel %vm553_vm15, %v661_v63, %v552_v17 }
 0x785   :  { %v527_v3 = vsel %vm526_vm14, %v659_v51, %v523_v1 }
 0x786   :  { %v529_v5 = vmul.f32 %v527_v3, %v870_v21  ;;  %v537_v6 = vadd.f32 %v536_v2, %v534_v0 }
 0x788   :  { %v532_v7 = vmul.f32 %v530_v54, %v529_v5  ;;  %v538_v8 = vrot.slane %v537_v6, 2 }
 0x78a   :  { %v535_v10 = vadd.f32 %v533_v58, %v532_v7  ;;  %v539_v11 = vadd.f32 %v538_v8, %v537_v6 }
 0x78c   :  { %v542_v12 = vrot.slane %v535_v10, 4  ;;  %v540_v15 = vrot.slane %v539_v11, 1 }
 0x78e   :  { %v543_v14 = vadd.f32 %v542_v12, %v535_v10  ;;  %v541_v19 = vadd.f32 %v540_v15, %v539_v11 }
 0x790   :  { %v544_v16 = vrot.slane %v543_v14, 2  ;;  %v555_v21 = vmul.f32 %v554_v22, %v541_v19 }
 0x792   :  { %v545_v18 = vadd.f32 %v544_v16, %v543_v14 }
 0x794   :  { %v546_v20 = vrot.slane %v545_v18, 1 }
 0x796   :  { %v547_v23 = vadd.f32 %v546_v20, %v545_v18 }
 0x798   :  { %v556_v24 = vmul.f32 %v554_v22, %v547_v23 }
 0x79a   :  { %v578_v25 = vsel %vm577_vm0, %v556_v24, %v555_v21 }
 0x79b   :  { %596 = vmatmul.f32.vlgmr.msrb.gmra.mxu0 %v578_v25 }
 0x818   :  { %v597_v27 = vpop.f32.mrf.mxu0 }
 0x819   :  { %v598_v28 = vadd.f32 %v597_v27, %v574_v26 }
 0x81b   :  { %600 = vst [vmem:[#allocation8] sm:$0x3] %v598_v28 }
 0x81c   :  { %611 = dma.vmem_to_hbm [thread:$0]  %s607_s29, 32, %s609_s5, [#allocation4]  }
 0x81d   :  { %762 = dma.done.wait [#allocation4], 32  }
 0x81e   :  { %763 = vsyncadd [#allocation4], 4294967264 }
 0x81f   :  { %616 = vsyncpa [#allocation3], 1 }
 0x820   :  { %617 = vsyncpa [#allocation6], 1 }
 0x821   :  { %618 = vsyncpa [#allocation4], 1 }

</bundles_post_ra>
